<compile_context>
chip_gen: v5e
topology: v5e:2x2
jax: 0.10.0
libtpu: 0.0.40
codegen_flags: <defaults>
</compile_context>

<pallas_src>
import functools

import jax
import jax.numpy as jnp
from jax.experimental import pallas as pl
from jax.experimental.pallas import tpu as pltpu


def _ldc_conv_kernel(x_ref, w_ref, o_ref, halo_ref, *, H, W, margin):
    # x_ref:    (1, Cin, H*W)              flat NCHW image, lane-dense
    # w_ref:    (9, Cout, Cin)             per-tap (masked) weights, tap = kh*3+kw
    # o_ref:    (1, Cout, H*W)             flat NCHW output, lane-dense
    # halo_ref: (Cin, margin + H*W + margin)  zero-margin scratch (in-kernel "padding")
    Cin = x_ref.shape[1]
    Cout = o_ref.shape[1]
    P = H * W

    # Zero-filled halo: shifted reads for rows -1 / H land in the zero margins.
    halo_ref[...] = jnp.zeros(halo_ref.shape, halo_ref.dtype)
    halo_ref[:, margin:margin + P] = x_ref[0]

    # Column-validity masks: a flat-index shift of +-1 wraps across rows at the
    # image borders (w == 0 reading w-1, w == W-1 reading w+1); mask those.
    col = jax.lax.broadcasted_iota(jnp.int32, (1, P), 1) % W
    col_ok_left = col >= 1          # taps that read column w-1
    col_ok_right = col < (W - 1)    # taps that read column w+1

    acc = jnp.zeros((Cout, P), jnp.float32)
    for kh in range(3):
        for kw in range(3):
            dh, dw = kh - 1, kw - 1
            shift = dh * W + dw
            start = margin + shift
            # Static shifted lane-slice of the halo buffer -> (Cin, P).
            xs = halo_ref[:, start:start + P]
            if dw == -1:
                xs = jnp.where(col_ok_left, xs, 0.0)
            elif dw == 1:
                xs = jnp.where(col_ok_right, xs, 0.0)
            # In-place channel contraction: (Cout, Cin) @ (Cin, P), f32 accum.
            acc = acc + jnp.dot(w_ref[kh * 3 + kw], xs,
                                preferred_element_type=jnp.float32)

    o_ref[0] = acc.astype(o_ref.dtype)   # lane-dense (Cout, 256) store


def enhancement_texture_ldc(x_nchw, weight_oihw, learnable_mask, theta):
    """Forward pass of Enhancement_texture_LDC (stride=1, pad=1, groups=1, no bias).

    Args:
      x_nchw:         (N, Cin, H, W) float32
      weight_oihw:    (Cout, Cin, 3, 3) float32 conv weight
      learnable_mask: (Cout, Cin) float32
      theta:          (1,) float32
    Returns:
      (N, Cout, H, W) float32
    """
    N, Cin, H, W = x_nchw.shape
    Cout = weight_oihw.shape[0]
    P = H * W
    # Halo margin: >= W+1 and 128-aligned so the big scratch store stays aligned.
    margin = ((W + 1 + 127) // 128) * 128

    # ---- LDC weight masking (tiny glue, plain JAX): only the center tap rescales ----
    center_mask = jnp.zeros((3, 3), jnp.float32).at[1, 1].set(1.0)
    w_sum = weight_oihw.sum(axis=(2, 3))                              # (Cout, Cin)
    mask = jnp.ones_like(weight_oihw) - \
        (theta[0] * learnable_mask * w_sum)[:, :, None, None] * center_mask[None, None]
    w_eff = weight_oihw * mask                                        # (Cout, Cin, 3, 3)
    # Per-tap weight pack: (KH, KW, O, I) -> (9, Cout, Cin), tap = kh*3 + kw.
    w_taps = jnp.transpose(w_eff, (2, 3, 0, 1)).reshape(9, Cout, Cin)

    # ---- flat "spatial on lanes" layout: free reshape, no HBM pad/transpose ----
    x_flat = x_nchw.reshape(N, Cin, P)

    kernel = functools.partial(_ldc_conv_kernel, H=H, W=W, margin=margin)
    out_flat = pl.pallas_call(
        kernel,
        out_shape=jax.ShapeDtypeStruct((N, Cout, P), x_nchw.dtype),
        grid_spec=pltpu.PrefetchScalarGridSpec(
            num_scalar_prefetch=0,
            grid=(N,),
            in_specs=[
                pl.BlockSpec((1, Cin, P), lambda n: (n, 0, 0)),
                pl.BlockSpec((9, Cout, Cin), lambda n: (0, 0, 0)),
            ],
            out_specs=pl.BlockSpec((1, Cout, P), lambda n: (n, 0, 0)),
            scratch_shapes=[
                pltpu.VMEM((Cin, margin + P + margin), jnp.float32),
            ],
        ),
        compiler_params=pltpu.CompilerParams(
            dimension_semantics=("parallel",)),
    )(x_flat, w_taps)

    return out_flat.reshape(N, Cout, H, W)


def _reference(x_nchw, weight_oihw, learnable_mask, theta):
    """Plain-JAX reference (mirrors the PyTorch forward)."""
    center_mask = jnp.zeros((3, 3), jnp.float32).at[1, 1].set(1.0)
    w_sum = weight_oihw.sum(axis=(2, 3))
    mask = jnp.ones_like(weight_oihw) - \
        (theta[0] * learnable_mask * w_sum)[:, :, None, None] * center_mask
    w_eff = weight_oihw * mask
    return jax.lax.conv_general_dilated(
        x_nchw, w_eff, window_strides=(1, 1), padding=((1, 1), (1, 1)),
        dimension_numbers=("NCHW", "OIHW", "NCHW"))


if __name__ == "__main__":
    # Small shapes consistent with the module: batch=2, Cin=4, Cout=8, 16x16.
    N, Cin, Cout, H, W = 2, 4, 8, 16, 16

    key = jax.random.PRNGKey(0)
    kx, kw = jax.random.split(key)
    x = jax.random.normal(kx, (N, Cin, H, W), jnp.float32)

    # Deterministic parameter init (Conv2d-like uniform init for weight; the
    # module's masks/theta init to ones and 0.5 respectively).
    fan_in = Cin * 3 * 3
    bound = 1.0 / (fan_in ** 0.5)
    weight = jax.random.uniform(kw, (Cout, Cin, 3, 3), jnp.float32,
                                minval=-bound, maxval=bound)
    learnable_mask = jnp.ones((Cout, Cin), jnp.float32)
    theta = jnp.ones((1,), jnp.float32) * 0.5

    out = enhancement_texture_ldc(x, weight, learnable_mask, theta)
    out = jax.block_until_ready(out)

    ref = jax.block_until_ready(_reference(x, weight, learnable_mask, theta))
    assert out.shape == (N, Cout, H, W)
    assert jnp.allclose(out, ref, atol=1e-4, rtol=1e-4)

    print("KERNEL_OK")
</pallas_src>

<mosaic_0001>
module attributes {stable_mosaic.version = 11 : i64} {
  func.func @_ldc_conv_kernel(%arg0: i32, %arg1: memref<1x4x256xf32, #tpu.memory_space<vmem>>, %arg2: memref<9x8x4xf32, #tpu.memory_space<vmem>>, %arg3: memref<1x8x256xf32, #tpu.memory_space<vmem>>, %arg4: memref<4x512xf32, #tpu.memory_space<vmem>>) attributes {dimension_semantics = [#tpu.dimension_semantics<parallel>], iteration_bounds = array<i64: 2>, scalar_prefetch = 0 : i64, scratch_operands = 1 : i64, tpu.core_type = #tpu.core_type<tc>, window_params = [{transform_indices = @transform_0, window_bounds = array<i64: 1, 4, 256>}, {pipeline_mode = #tpu.pipeline_mode<synchronous>, transform_indices = @transform_1, window_bounds = array<i64: 9, 8, 4>}, {transform_indices = @transform_2, window_bounds = array<i64: 1, 8, 256>}]} {
    %cst = arith.constant 0.000000e+00 : f32
    %0 = vector.broadcast %cst : f32 to vector<4x512xf32>
    %c0 = arith.constant 0 : index
    %c0_0 = arith.constant 0 : index
    %1 = vector.load %arg4[%c0, %c0_0] : memref<4x512xf32, #tpu.memory_space<vmem>>, vector<4x512xf32>
    tpu.vector_store %arg4[%c0, %c0_0], %0 {strides = array<i32>} : memref<4x512xf32, #tpu.memory_space<vmem>>, vector<4x512xf32>,
    %c0_1 = arith.constant 0 : index
    %c0_2 = arith.constant 0 : index
    %c0_3 = arith.constant 0 : index
    %2 = vector.load %arg1[%c0_1, %c0_2, %c0_3] : memref<1x4x256xf32, #tpu.memory_space<vmem>>, vector<1x4x256xf32>
    %3 = vector.shape_cast %2 : vector<1x4x256xf32> to vector<4x256xf32>
    %c0_4 = arith.constant 0 : index
    %c128 = arith.constant 128 : index
    %4 = vector.load %arg4[%c0_4, %c128] : memref<4x512xf32, #tpu.memory_space<vmem>>, vector<4x256xf32>
    tpu.vector_store %arg4[%c0_4, %c128], %3 {strides = array<i32>} : memref<4x512xf32, #tpu.memory_space<vmem>>, vector<4x256xf32>,
    %5 = tpu.iota {dimensions = array<i32: 1>} : vector<1x256xi32>
    %c16_i32 = arith.constant 16 : i32
    %c0_i32 = arith.constant 0 : i32
    %6 = arith.cmpi eq, %c16_i32, %c0_i32 : i32
    %c1_i32 = arith.constant 1 : i32
    %7 = arith.select %6, %c1_i32, %c16_i32 : i32
    %8 = vector.broadcast %7 : i32 to vector<1x256xi32>
    %9 = arith.remsi %5, %8 : vector<1x256xi32>
    %c0_i32_5 = arith.constant 0 : i32
    %10 = vector.broadcast %c0_i32_5 : i32 to vector<1x256xi32>
    %11 = arith.cmpi ne, %9, %10 : vector<1x256xi32>
    %c0_i32_6 = arith.constant 0 : i32
    %12 = vector.broadcast %c0_i32_6 : i32 to vector<1x256xi32>
    %13 = arith.cmpi slt, %9, %12 : vector<1x256xi32>
    %c0_i32_7 = arith.constant 0 : i32
    %14 = arith.cmpi slt, %7, %c0_i32_7 : i32
    %15 = vector.broadcast %14 : i1 to vector<1x256xi1>
    %16 = vector.broadcast %15 : vector<1x256xi1> to vector<1x256xi1>
    %17 = arith.xori %13, %16 : vector<1x256xi1>
    %18 = arith.andi %17, %11 : vector<1x256xi1>
    %19 = vector.broadcast %7 : i32 to vector<1x256xi32>
    %20 = arith.addi %9, %19 : vector<1x256xi32>
    %21 = arith.select %18, %20, %9 : vector<1x256xi1>, vector<1x256xi32>
    %c1_i32_8 = arith.constant 1 : i32
    %22 = vector.broadcast %c1_i32_8 : i32 to vector<1x256xi32>
    %23 = arith.cmpi sge, %21, %22 : vector<1x256xi32>
    %c15_i32 = arith.constant 15 : i32
    %24 = vector.broadcast %c15_i32 : i32 to vector<1x256xi32>
    %25 = arith.cmpi slt, %21, %24 : vector<1x256xi32>
    %cst_9 = arith.constant 0.000000e+00 : f32
    %26 = vector.broadcast %cst_9 : f32 to vector<8x256xf32>
    %c0_10 = arith.constant 0 : index
    %c111 = arith.constant 111 : index
    %27 = vector.load %arg4[%c0_10, %c111] : memref<4x512xf32, #tpu.memory_space<vmem>>, vector<4x256xf32>
    %cst_11 = arith.constant 0.000000e+00 : f32
    %28 = vector.shape_cast %23 : vector<1x256xi1> to vector<1x256xi1>
    %29 = vector.broadcast %28 : vector<1x256xi1> to vector<4x256xi1>
    %30 = vector.broadcast %cst_11 : f32 to vector<4x256xf32>
    %31 = arith.select %29, %27, %30 : vector<4x256xi1>, vector<4x256xf32>
    %c0_12 = arith.constant 0 : index
    %c0_13 = arith.constant 0 : index
    %c0_14 = arith.constant 0 : index
    %32 = vector.load %arg2[%c0_12, %c0_13, %c0_14] : memref<9x8x4xf32, #tpu.memory_space<vmem>>, vector<1x8x4xf32>
    %33 = vector.shape_cast %32 : vector<1x8x4xf32> to vector<8x4xf32>
    %cst_15 = arith.constant dense<0.000000e+00> : vector<8x256xf32>
    %34 = tpu.matmul %33, %31, %cst_15 {dimension_numbers = #tpu.dot_dimension_numbers<[1], [0], [0], [1], [0, 0, 1, 1], [], []>} : vector<8x4xf32>, vector<4x256xf32>, vector<8x256xf32> -> vector<8x256xf32>
    %35 = arith.addf %26, %34 : vector<8x256xf32>
    %c0_16 = arith.constant 0 : index
    %c112 = arith.constant 112 : index
    %36 = vector.load %arg4[%c0_16, %c112] : memref<4x512xf32, #tpu.memory_space<vmem>>, vector<4x256xf32>
    %c1 = arith.constant 1 : index
    %c0_17 = arith.constant 0 : index
    %c0_18 = arith.constant 0 : index
    %37 = vector.load %arg2[%c1, %c0_17, %c0_18] : memref<9x8x4xf32, #tpu.memory_space<vmem>>, vector<1x8x4xf32>
    %38 = vector.shape_cast %37 : vector<1x8x4xf32> to vector<8x4xf32>
    %cst_19 = arith.constant dense<0.000000e+00> : vector<8x256xf32>
    %39 = tpu.matmul %38, %36, %cst_19 {dimension_numbers = #tpu.dot_dimension_numbers<[1], [0], [0], [1], [0, 0, 1, 1], [], []>} : vector<8x4xf32>, vector<4x256xf32>, vector<8x256xf32> -> vector<8x256xf32>
    %40 = arith.addf %35, %39 : vector<8x256xf32>
    %c0_20 = arith.constant 0 : index
    %c113 = arith.constant 113 : index
    %41 = vector.load %arg4[%c0_20, %c113] : memref<4x512xf32, #tpu.memory_space<vmem>>, vector<4x256xf32>
    %cst_21 = arith.constant 0.000000e+00 : f32
    %42 = vector.shape_cast %25 : vector<1x256xi1> to vector<1x256xi1>
    %43 = vector.broadcast %42 : vector<1x256xi1> to vector<4x256xi1>
    %44 = vector.broadcast %cst_21 : f32 to vector<4x256xf32>
    %45 = arith.select %43, %41, %44 : vector<4x256xi1>, vector<4x256xf32>
    %c2 = arith.constant 2 : index
    %c0_22 = arith.constant 0 : index
    %c0_23 = arith.constant 0 : index
    %46 = vector.load %arg2[%c2, %c0_22, %c0_23] : memref<9x8x4xf32, #tpu.memory_space<vmem>>, vector<1x8x4xf32>
    %47 = vector.shape_cast %46 : vector<1x8x4xf32> to vector<8x4xf32>
    %cst_24 = arith.constant dense<0.000000e+00> : vector<8x256xf32>
    %48 = tpu.matmul %47, %45, %cst_24 {dimension_numbers = #tpu.dot_dimension_numbers<[1], [0], [0], [1], [0, 0, 1, 1], [], []>} : vector<8x4xf32>, vector<4x256xf32>, vector<8x256xf32> -> vector<8x256xf32>
    %49 = arith.addf %40, %48 : vector<8x256xf32>
    %c0_25 = arith.constant 0 : index
    %c127 = arith.constant 127 : index
    %50 = vector.load %arg4[%c0_25, %c127] : memref<4x512xf32, #tpu.memory_space<vmem>>, vector<4x256xf32>
    %cst_26 = arith.constant 0.000000e+00 : f32
    %51 = vector.shape_cast %23 : vector<1x256xi1> to vector<1x256xi1>
    %52 = vector.broadcast %51 : vector<1x256xi1> to vector<4x256xi1>
    %53 = vector.broadcast %cst_26 : f32 to vector<4x256xf32>
    %54 = arith.select %52, %50, %53 : vector<4x256xi1>, vector<4x256xf32>
    %c3 = arith.constant 3 : index
    %c0_27 = arith.constant 0 : index
    %c0_28 = arith.constant 0 : index
    %55 = vector.load %arg2[%c3, %c0_27, %c0_28] : memref<9x8x4xf32, #tpu.memory_space<vmem>>, vector<1x8x4xf32>
    %56 = vector.shape_cast %55 : vector<1x8x4xf32> to vector<8x4xf32>
    %cst_29 = arith.constant dense<0.000000e+00> : vector<8x256xf32>
    %57 = tpu.matmul %56, %54, %cst_29 {dimension_numbers = #tpu.dot_dimension_numbers<[1], [0], [0], [1], [0, 0, 1, 1], [], []>} : vector<8x4xf32>, vector<4x256xf32>, vector<8x256xf32> -> vector<8x256xf32>
    %58 = arith.addf %49, %57 : vector<8x256xf32>
    %c0_30 = arith.constant 0 : index
    %c128_31 = arith.constant 128 : index
    %59 = vector.load %arg4[%c0_30, %c128_31] : memref<4x512xf32, #tpu.memory_space<vmem>>, vector<4x256xf32>
    %c4 = arith.constant 4 : index
    %c0_32 = arith.constant 0 : index
    %c0_33 = arith.constant 0 : index
    %60 = vector.load %arg2[%c4, %c0_32, %c0_33] : memref<9x8x4xf32, #tpu.memory_space<vmem>>, vector<1x8x4xf32>
    %61 = vector.shape_cast %60 : vector<1x8x4xf32> to vector<8x4xf32>
    %cst_34 = arith.constant dense<0.000000e+00> : vector<8x256xf32>
    %62 = tpu.matmul %61, %59, %cst_34 {dimension_numbers = #tpu.dot_dimension_numbers<[1], [0], [0], [1], [0, 0, 1, 1], [], []>} : vector<8x4xf32>, vector<4x256xf32>, vector<8x256xf32> -> vector<8x256xf32>
    %63 = arith.addf %58, %62 : vector<8x256xf32>
    %c0_35 = arith.constant 0 : index
    %c129 = arith.constant 129 : index
    %64 = vector.load %arg4[%c0_35, %c129] : memref<4x512xf32, #tpu.memory_space<vmem>>, vector<4x256xf32>
    %cst_36 = arith.constant 0.000000e+00 : f32
    %65 = vector.shape_cast %25 : vector<1x256xi1> to vector<1x256xi1>
    %66 = vector.broadcast %65 : vector<1x256xi1> to vector<4x256xi1>
    %67 = vector.broadcast %cst_36 : f32 to vector<4x256xf32>
    %68 = arith.select %66, %64, %67 : vector<4x256xi1>, vector<4x256xf32>
    %c5 = arith.constant 5 : index
    %c0_37 = arith.constant 0 : index
    %c0_38 = arith.constant 0 : index
    %69 = vector.load %arg2[%c5, %c0_37, %c0_38] : memref<9x8x4xf32, #tpu.memory_space<vmem>>, vector<1x8x4xf32>
    %70 = vector.shape_cast %69 : vector<1x8x4xf32> to vector<8x4xf32>
    %cst_39 = arith.constant dense<0.000000e+00> : vector<8x256xf32>
    %71 = tpu.matmul %70, %68, %cst_39 {dimension_numbers = #tpu.dot_dimension_numbers<[1], [0], [0], [1], [0, 0, 1, 1], [], []>} : vector<8x4xf32>, vector<4x256xf32>, vector<8x256xf32> -> vector<8x256xf32>
    %72 = arith.addf %63, %71 : vector<8x256xf32>
    %c0_40 = arith.constant 0 : index
    %c143 = arith.constant 143 : index
    %73 = vector.load %arg4[%c0_40, %c143] : memref<4x512xf32, #tpu.memory_space<vmem>>, vector<4x256xf32>
    %cst_41 = arith.constant 0.000000e+00 : f32
    %74 = vector.shape_cast %23 : vector<1x256xi1> to vector<1x256xi1>
    %75 = vector.broadcast %74 : vector<1x256xi1> to vector<4x256xi1>
    %76 = vector.broadcast %cst_41 : f32 to vector<4x256xf32>
    %77 = arith.select %75, %73, %76 : vector<4x256xi1>, vector<4x256xf32>
    %c6 = arith.constant 6 : index
    %c0_42 = arith.constant 0 : index
    %c0_43 = arith.constant 0 : index
    %78 = vector.load %arg2[%c6, %c0_42, %c0_43] : memref<9x8x4xf32, #tpu.memory_space<vmem>>, vector<1x8x4xf32>
    %79 = vector.shape_cast %78 : vector<1x8x4xf32> to vector<8x4xf32>
    %cst_44 = arith.constant dense<0.000000e+00> : vector<8x256xf32>
    %80 = tpu.matmul %79, %77, %cst_44 {dimension_numbers = #tpu.dot_dimension_numbers<[1], [0], [0], [1], [0, 0, 1, 1], [], []>} : vector<8x4xf32>, vector<4x256xf32>, vector<8x256xf32> -> vector<8x256xf32>
    %81 = arith.addf %72, %80 : vector<8x256xf32>
    %c0_45 = arith.constant 0 : index
    %c144 = arith.constant 144 : index
    %82 = vector.load %arg4[%c0_45, %c144] : memref<4x512xf32, #tpu.memory_space<vmem>>, vector<4x256xf32>
    %c7 = arith.constant 7 : index
    %c0_46 = arith.constant 0 : index
    %c0_47 = arith.constant 0 : index
    %83 = vector.load %arg2[%c7, %c0_46, %c0_47] : memref<9x8x4xf32, #tpu.memory_space<vmem>>, vector<1x8x4xf32>
    %84 = vector.shape_cast %83 : vector<1x8x4xf32> to vector<8x4xf32>
    %cst_48 = arith.constant dense<0.000000e+00> : vector<8x256xf32>
    %85 = tpu.matmul %84, %82, %cst_48 {dimension_numbers = #tpu.dot_dimension_numbers<[1], [0], [0], [1], [0, 0, 1, 1], [], []>} : vector<8x4xf32>, vector<4x256xf32>, vector<8x256xf32> -> vector<8x256xf32>
    %86 = arith.addf %81, %85 : vector<8x256xf32>
    %c0_49 = arith.constant 0 : index
    %c145 = arith.constant 145 : index
    %87 = vector.load %arg4[%c0_49, %c145] : memref<4x512xf32, #tpu.memory_space<vmem>>, vector<4x256xf32>
    %cst_50 = arith.constant 0.000000e+00 : f32
    %88 = vector.shape_cast %25 : vector<1x256xi1> to vector<1x256xi1>
    %89 = vector.broadcast %88 : vector<1x256xi1> to vector<4x256xi1>
    %90 = vector.broadcast %cst_50 : f32 to vector<4x256xf32>
    %91 = arith.select %89, %87, %90 : vector<4x256xi1>, vector<4x256xf32>
    %c8 = arith.constant 8 : index
    %c0_51 = arith.constant 0 : index
    %c0_52 = arith.constant 0 : index
    %92 = vector.load %arg2[%c8, %c0_51, %c0_52] : memref<9x8x4xf32, #tpu.memory_space<vmem>>, vector<1x8x4xf32>
    %93 = vector.shape_cast %92 : vector<1x8x4xf32> to vector<8x4xf32>
    %cst_53 = arith.constant dense<0.000000e+00> : vector<8x256xf32>
    %94 = tpu.matmul %93, %91, %cst_53 {dimension_numbers = #tpu.dot_dimension_numbers<[1], [0], [0], [1], [0, 0, 1, 1], [], []>} : vector<8x4xf32>, vector<4x256xf32>, vector<8x256xf32> -> vector<8x256xf32>
    %95 = arith.addf %86, %94 : vector<8x256xf32>
    %c0_54 = arith.constant 0 : index
    %c0_55 = arith.constant 0 : index
    %c0_56 = arith.constant 0 : index
    %96 = vector.load %arg3[%c0_54, %c0_55, %c0_56] : memref<1x8x256xf32, #tpu.memory_space<vmem>>, vector<1x8x256xf32>
    %97 = vector.shape_cast %96 : vector<1x8x256xf32> to vector<8x256xf32>
    %98 = vector.shape_cast %95 : vector<8x256xf32> to vector<1x8x256xf32>
    tpu.vector_store %arg3[%c0_54, %c0_55, %c0_56], %98 {strides = array<i32>} : memref<1x8x256xf32, #tpu.memory_space<vmem>>, vector<1x8x256xf32>,
    return
  }
  func.func @transform_0(%arg0: i32) -> (i32, i32, i32) {
    %c0_i32 = arith.constant 0 : i32
    %c0_i32_0 = arith.constant 0 : i32
    %c0_i32_1 = arith.constant 0 : i32
    return %arg0, %c0_i32, %c0_i32_0 : i32, i32, i32
  }
  func.func @transform_1(%arg0: i32) -> (i32, i32, i32) {
    %c0_i32 = arith.constant 0 : i32
    %c0_i32_0 = arith.constant 0 : i32
    %c0_i32_1 = arith.constant 0 : i32
    %c0_i32_2 = arith.constant 0 : i32
    return %c0_i32, %c0_i32_0, %c0_i32_1 : i32, i32, i32
  }
  func.func @transform_2(%arg0: i32) -> (i32, i32, i32) {
    %c0_i32 = arith.constant 0 : i32
    %c0_i32_0 = arith.constant 0 : i32
    %c0_i32_1 = arith.constant 0 : i32
    return %arg0, %c0_i32, %c0_i32_0 : i32, i32, i32
  }
}

</mosaic_0001>

<bundles_post_ra>
// kernel: tpu_custom_call.1
= control target key start
LH: loop header
LB: loop body
LE: loop exit
PB: predicated region body
PF: predicated region fallthrough
CT: control target
= control target key end

     0   :  { %7 = vsyncpa [#allocation4], 0  ;;  %s1310_s0 = inlined_call_operand.vmem [shape: f32[2,4,256], index: 0, kind: input, shape index: {}]   ;;  %s1311_s1 = inlined_call_operand.vmem [shape: f32[9,8,4], index: 1, kind: input, shape index: {}]   ;;  %s1312_s2 = inlined_call_operand.hbm [shape: f32[2,8,256], index: 2, kind: output, shape index: {}]  }
   0x1   :  { %9 = vsyncpa [#allocation4 + $0x1], 0  ;;  %s1106_s9 = smov 0   ;;  %s1108_s10 = smov 0  }
   0x2   :  { %s1110_s11 = smov 0   ;;  %s1112_s12 = smov 0  }
   0x3 LB: > { %s1127_s13 = sadd.s32 4294967295, %s1080_s12   ;;  %s912_s14 = sadd.s32 4294967294, %s1080_s12   ;;  %s1080_s12 = sphi %s1112_s12, %s1326_s12   ;;  %s1076_s11 = sphi %s1110_s11, %s1325_s11   ;;  %s1072_s10 = sphi %s1108_s10, %s1324_s10   ;;  %s1068_s9 = sphi %s1106_s9, %s1323_s9  }
   0x4   : > { %s1131_s15 = sadd.s32 1, %s1080_s12   ;;  %s69_s16 = sadd.s32 1, %s1076_s11 }
   0x5   : > { %s66_s17 = ssub.s32 %s1080_s12, %s1131_s15  ;;  %p79_p0 = scmp.ne.s32.totalorder %s1076_s11, %s1072_s10 }
   0x6   : > { %p67_p1 = scmp.eq.s32.totalorder %s66_s17, 0  ;;  %p80_p2 = scmp.eq.s32.totalorder %s1127_s13, 1 }
   0x7   : > { %p85_p3 = scmp.ne.s32.totalorder %s1072_s10, %s1068_s9  ;;  %p86_p4 = scmp.eq.s32.totalorder %s912_s14, 1 }
   0x8   : > { %s1142_s18 = scalar_select %p67_p1, %s1076_s11, %s69_s16  }
   0x9   : > { %p1144_p5 = por %p80_p2, %p79_p0  ;;  %p1148_p6 = por %p86_p4, %p85_p3 }
   0xa   : > { %p915_p7 = scmp.ge.s32.totalorder %s1080_s12, 1  ;;  %p115_p8 = scmp.lt.s32.totalorder %s1080_s12, 3 }
   0xc   : > { %p116_p9 = pnand %p915_p7, %p115_p8 }
   0xd   : > { %p137_p10 = scmp.lt.s32.totalorder (!%p116_p9), %s1127_s13, 1  ;;  %s1083_s26 = smov (!%p116_p9), 17  }
   0xe   : > { %119 = sbr.rel (%p116_p9) target bundleno = 356 (0x164), region = 28  ;;  %s1084_s27 = smov (!%p116_p9), 16  }
   0xf   : > { %s1085_s28 = smov (!%p116_p9), 15   ;;  %s1086_s29 = smov (!%p116_p9), 1  }
  0x10   : > { %s1087_s30 = smov (!%p116_p9), 127   ;;  %s1088_s3 = smov (!%p116_p9), 113  }
  0x11   : > { %s1089_s4 = smov (!%p116_p9), 112   ;;  %s1090_s5 = smov (!%p116_p9), 111  }
  0x12   : > { %s969_s7 = sshll.u32 (!%p116_p9), %s1127_s13, 4 }
  0x13   : > { %v1082_v0 = vmov 0.0   ;;  %s138_s21 = scalar_select %p137_p10, %s1127_s13, 1  ;;  %v146_v38 = vlaneseq  ;;  %vm223_vm0 = vcmask 130048   ;;  %vm230_vm1 = vcmask 1043456   ;;  %v919_v40 = vld [vmem:[%s1311_s1 + $0x8] sm:$0xff]  ;;  %v204_v57 = vld [vmem:[%s1311_s1] sm:$0xff] }
  0x14   : > { %142 = vst [vmem:[#allocation2] sm:$0xff] %v1082_v0  ;;  %vm226_vm2 = vcmask 31744   ;;  %vm197_vm3 = vcmask 138240   ;;  %vm344_vm6 = vcmask 121856   ;;  %vm420_vm9 = vcmask 7168   ;;  %s848_s16 = scalar_lea.hbm %s1312_s2, %s969_s7 }
  0x15   : > { %143 = vst [vmem:[#allocation2 + $0x8] sm:$0xff] %v1082_v0  ;;  %s968_s22 = sshll.u32 %s138_s21, 3  ;;  %v147_v42 = vand.u32 127, %v146_v38  ;;  %vm552_vm10 = vcmask 1039360   ;;  %vm628_vm11 = vcmask 924672   ;;  %vm706_vm12 = vcmask 916480  }
  0x16   : > { %s141_s25 = scalar_lea.vmem %s1310_s0, %s968_s22  ;;  %vm774_vm13 = vcmask 908288   ;;  %s852_s22 = sshll.u32 %s848_s16, 4  ;;  %s853_s22 = int_to_ptr.hbm [resolvable:$true] %s852_s22 }
  0x17   : > { %v1159_v1 = vld [vmem:[%s141_s25] sm:$0xff]  ;;  %v148_v44 = vadd.s32 128, %v147_v42  ;;  %v153_v46 = vand.u32 15, %v147_v42  ;;  %s1032_s23 = sshra.s32 %s853_s22, 4  ;;  %s1033_s23 = int_to_ptr.hbm [resolvable:$true] %s1032_s23 }
  0x18   : > { %145 = vst [vmem:[#allocation2 + $0x4] sm:$0xff] %v1159_v1  ;;  %s1034_s24 = scalar_lea.hbm %s1033_s23, 16  ;;  %p1039_p0 = scmp.lt.s32.totalorder %s1033_s23, %s1312_s2 }
  0x19   : > { %v160_v47 = vand.u32 15, %v148_v44  ;;  %vm1177_vm4 = vcmp.ge.s32.totalorder %v153_v46, 1  ;;  %vm1199_vm7 = vcmp.lt.s32.totalorder %v153_v46, 15  ;;  %p1035_p11 = scmp.ne.s32.totalorder %s1033_s23, %s1034_s24 }
  0x1b   : > { %vm1181_vm5 = vcmp.ge.s32.totalorder %v160_v47, 1  ;;  %vm1203_vm8 = vcmp.lt.s32.totalorder %v160_v47, 15  ;;  %p1036_p12 = pnand %p1035_p11, %p1144_p5 }
  0x1c   : > { %v537_v16 = vld [vmem:[#allocation2 + $0xc] sm:$0xf] }
  0x1d   : > { %v613_v20 = vld [vmem:[#allocation2 + $0xc] sm:$0xf]  ;;  %p1037_p13 = pneg %p1036_p12 }
  0x1e   : > { %v689_v24 = vld [vmem:[#allocation2 + $0xc] sm:$0xf] }
  0x1f   : > { %v178_v2 = vld [vmem:[#allocation2 + $0x8] sm:$0xf]  ;;  %v177_v3 = vld [vmem:[#allocation2] sm:$0xff]  ;;  %v759_v28 = vld [vmem:[#allocation2 + $0xc] sm:$0xf] }
  0x20   : > { %187 = vst [vmem:[#allocation1 + $0x10] ss:$2 sm:$0xff] %v178_v2  ;;  %v206_v4 = vld [vmem:[#allocation2 + $0x8] sm:$0xf] }
  0x21   : > { %185 = vst [vmem:[#allocation1] ss:$2 sm:$0xff] %v177_v3  ;;  %v325_v9 = vld [vmem:[#allocation2 + $0x8] sm:$0xf] }
  0x22   : > { %v405_v12 = vld [vmem:[#allocation2 + $0x8] sm:$0xf] }
  0x27   : > { %v190_v5 = vld.sshfl [vmem:[#allocation1 + $0x10] sm:$0xff pattern:$0x75316420] }
  0x28   : > { %195 = vrot.lane.b32.xlu1 %v190_v5, %s1083_s26  ;;  %213 = vst [vmem:[#allocation1 + $0x10] ss:$2 sm:$0xff] %v206_v4  ;;  %v188_v6 = vld.sshfl [vmem:[#allocation1] sm:$0xff pattern:$0x75316420] }
  0x29   : > { %191 = vrot.lane.b32.xlu0 %v188_v6, %s1083_s26  ;;  %v189_v7 = vld.sshfl [vmem:[#allocation1 + $0x8] sm:$0xff pattern:$0x75316420] }
  0x2a   : > { %211 = vst [vmem:[#allocation1] ss:$2 sm:$0xff] %v177_v3 }
  0x2f   : > { %v216_v8 = vld.sshfl [vmem:[#allocation1 + $0x10] sm:$0xff pattern:$0x75316420] }
  0x30   : > { %334 = vst [vmem:[#allocation1 + $0x10] ss:$2 sm:$0xff] %v325_v9  ;;  %v933_v9 = vld [vmem:[%s1311_s1 + $0x18] sm:$0xff] }
  0x31   : > { %193 = vrot.lane.b32.xlu0 %v189_v7, %s1083_s26  ;;  %v214_v10 = vld.sshfl [vmem:[#allocation1] sm:$0xff pattern:$0x75316420]  ;;  %v215_v11 = vld.sshfl [vmem:[#allocation1 + $0x8] sm:$0xff pattern:$0x75316420] }
  0x32   : > { %217 = vrot.lane.b32.xlu1 %v214_v10, %s1084_s27  ;;  %219 = vrot.lane.b32.xlu2 %v215_v11, %s1084_s27  ;;  %332 = vst [vmem:[#allocation1] ss:$2 sm:$0xff] %v177_v3 }
  0x37   : > { %v337_v13 = vld.sshfl [vmem:[#allocation1 + $0x10] sm:$0xff pattern:$0x75316420] }
  0x38   : > { %410 = vst [vmem:[#allocation1 + $0x10] ss:$2 sm:$0xff] %v405_v12  ;;  %v938_v12 = vld [vmem:[%s1311_s1 + $0x20] sm:$0xff] }
  0x39   : > { %v336_v14 = vld.sshfl [vmem:[#allocation1 + $0x8] sm:$0xff pattern:$0x75316420]  ;;  %v335_v15 = vld.sshfl [vmem:[#allocation1] sm:$0xff pattern:$0x75316420] }
  0x3a   : > { %340 = vrot.lane.b32.xlu1 %v336_v14, %s1085_s28  ;;  %338 = vrot.lane.b32.xlu0 %v335_v15, %s1085_s28  ;;  %408 = vst [vmem:[#allocation1] ss:$2 sm:$0xff] %v177_v3 }
  0x3b   : > { %221 = vrot.lane.b32.xlu2 %v216_v8, %s1084_s27  ;;  %s1038_s27 = scalar_lea.hbm %s1312_s2, 32 }
  0x3c   : > { %p1040_p1 = scmp.lt.s32.totalorder %s1038_s27, %s1034_s24 }
  0x3e   : > { %p1041_p2 = por %p1040_p1, %p1039_p0 }
  0x3f   : > { %v413_v17 = vld.sshfl [vmem:[#allocation1 + $0x10] sm:$0xff pattern:$0x75316420] }
  0x40   : > { %542 = vst [vmem:[#allocation1 + $0x10] ss:$2 sm:$0xff] %v537_v16  ;;  %p1042_p3 = pnand %p1041_p2, %p1037_p13 }
  0x41   : > { %v412_v18 = vld.sshfl [vmem:[#allocation1 + $0x8] sm:$0xff pattern:$0x75316420]  ;;  %v411_v19 = vld.sshfl [vmem:[#allocation1] sm:$0xff pattern:$0x75316420] }
  0x42   : > { %416 = vrot.lane.b32.xlu1 %v412_v18, %s1086_s29  ;;  %414 = vrot.lane.b32.xlu0 %v411_v19, %s1086_s29  ;;  %484 = vst [vmem:[#allocation1] ss:$2 sm:$0xff] %v1159_v1  ;;  %v943_v18 = vld [vmem:[%s1311_s1 + $0x28] sm:$0xff] }
  0x43   : > { %342 = vrot.lane.b32.xlu2 %v337_v13, %s1085_s28 }
  0x47   : > { %v545_v21 = vld.sshfl [vmem:[#allocation1 + $0x10] sm:$0xff pattern:$0x75316420] }
  0x48   : > { %618 = vst [vmem:[#allocation1 + $0x10] ss:$2 sm:$0xff] %v613_v20 }
  0x49   : > { %v1163_v22 = vld.sshfl [vmem:[#allocation1] sm:$0xff pattern:$0x75316420]  ;;  %v1165_v23 = vld.sshfl [vmem:[#allocation1 + $0x8] sm:$0xff pattern:$0x75316420] }
  0x4a   : > { %540 = vst [vmem:[#allocation1] ss:$2 sm:$0xff] %v1159_v1 }
  0x4b   : > { %418 = vrot.lane.b32.xlu2 %v413_v17, %s1086_s29 }
  0x4f   : > { %v621_v25 = vld.sshfl [vmem:[#allocation1 + $0x10] sm:$0xff pattern:$0x75316420] }
  0x50   : > { %696 = vst [vmem:[#allocation1 + $0x10] ss:$2 sm:$0xff] %v689_v24 }
  0x51   : > { %v544_v26 = vld.sshfl [vmem:[#allocation1 + $0x8] sm:$0xff pattern:$0x75316420]  ;;  %v543_v27 = vld.sshfl [vmem:[#allocation1] sm:$0xff pattern:$0x75316420] }
  0x52   : > { %548 = vrot.lane.b32.xlu1 %v544_v26, %s1087_s30  ;;  %546 = vrot.lane.b32.xlu0 %v543_v27, %s1087_s30  ;;  %616 = vst [vmem:[#allocation1] ss:$2 sm:$0xff] %v1159_v1  ;;  %v948_v26 = vld [vmem:[%s1311_s1 + $0x30] sm:$0xff] }
  0x53   : > { %550 = vrot.lane.b32.xlu2 %v545_v21, %s1087_s30 }
  0x57   : > { %v699_v29 = vld.sshfl [vmem:[#allocation1 + $0x10] sm:$0xff pattern:$0x75316420] }
  0x58   : > { %764 = vst [vmem:[#allocation1 + $0x10] ss:$2 sm:$0xff] %v759_v28 }
  0x59   : > { %v620_v30 = vld.sshfl [vmem:[#allocation1 + $0x8] sm:$0xff pattern:$0x75316420]  ;;  %v619_v31 = vld.sshfl [vmem:[#allocation1] sm:$0xff pattern:$0x75316420] }
  0x5a   : > { %624 = vrot.lane.b32.xlu1 %v620_v30, %s1088_s3  ;;  %622 = vrot.lane.b32.xlu0 %v619_v31, %s1088_s3  ;;  %694 = vst [vmem:[#allocation1] ss:$2 sm:$0xff] %v1159_v1 }
  0x5b   : > { %626 = vrot.lane.b32.xlu2 %v621_v25, %s1088_s3 }
  0x5f   : > { %v767_v34 = vld.sshfl [vmem:[#allocation1 + $0x10] sm:$0xff pattern:$0x75316420] }
  0x61   : > { %v698_v32 = vld.sshfl [vmem:[#allocation1 + $0x8] sm:$0xff pattern:$0x75316420]  ;;  %v697_v33 = vld.sshfl [vmem:[#allocation1] sm:$0xff pattern:$0x75316420] }
  0x62   : > { %702 = vrot.lane.b32.xlu1 %v698_v32, %s1089_s4  ;;  %700 = vrot.lane.b32.xlu0 %v697_v33, %s1089_s4  ;;  %762 = vst [vmem:[#allocation1] ss:$2 sm:$0xff] %v1159_v1  ;;  %v928_v1 = vld [vmem:[%s1311_s1 + $0x10] sm:$0xff]  ;;  %v953_v32 = vld [vmem:[%s1311_s1 + $0x38] sm:$0xff] }
  0x63   : > { %704 = vrot.lane.b32.xlu2 %v699_v29, %s1089_s4 }
  0x69   : > { %v766_v35 = vld.sshfl [vmem:[#allocation1 + $0x8] sm:$0xff pattern:$0x75316420]  ;;  %v765_v36 = vld.sshfl [vmem:[#allocation1] sm:$0xff pattern:$0x75316420] }
  0x6a   : > { %770 = vrot.lane.b32.xlu1 %v766_v35, %s1090_s5  ;;  %768 = vrot.lane.b32.xlu0 %v765_v36, %s1090_s5 }
  0x6b   : > { %772 = vrot.lane.b32.xlu2 %v767_v34, %s1090_s5  ;;  %s134_s5 = sand.u32 1, %s1072_s10  }
  0x6c   : > { %s916_s6 = sshll.u32 %s134_s5, 4  ;;  %s837_s13 = scalar_lea.sflag [#allocation4], %s134_s5 }
  0x6d   : > { %s136_s17 = scalar_lea.vmem [#allocation3], %s916_s6 }
  0x6e   : > { %s850_s21 = sshll.u32 %s136_s17, 4  ;;  %s851_s21 = int_to_ptr.vmem [resolvable:$true] %s850_s21 }
  0x8c   : > { %v220_v37 = vpop.permute.xlu2 %219 }
  0x95   : > { %v222_v39 = vpop.permute.xlu2 %221 }
  0x96   : > { %v225_v41 = vsel %vm223_vm0, %v220_v37, %v222_v39 }
  0x97   : > { %922 = vmatpush.msk.msra.mxu1 %vm230_vm1, %v225_v41 }
  0x98   : > { %923 = vmatmul.msk.f32.vlgmr.msra.gmra.mxu1 %vm226_vm2, %v919_v40 }
  0x9a   : > { %v196_v43 = vpop.permute.xlu1 %195 }
  0x9b   : > { %v192_v45 = vpop.permute.xlu0 %191 }
  0x9d   : > { %v343_v58 = vpop.permute.xlu2 %342 }
  0xa3   : > { %v194_v50 = vpop.permute.xlu0 %193 }
  0xa4   : > { %v218_v51 = vpop.permute.xlu1 %217  ;;  %v198_v52 = vsel %vm197_vm3, %v192_v45, %v194_v50  ;;  %v199_v53 = vsel %vm197_vm3, %v194_v50, %v196_v43 }
  0xa5   : > { %v224_v54 = vsel %vm223_vm0, %v218_v51, %v220_v37  ;;  %v202_v55 = vsel %vm1177_vm4, %v198_v52, 0.0  ;;  %v203_v56 = vsel %vm1181_vm5, %v199_v53, 0.0  ;;  %v419_v4 = vpop.permute.xlu2 %418 }
  0xa6   : > { %920 = vmatpush.msk.msra.mxu0 %vm230_vm1, %v224_v54  ;;  %924 = vmatpush.msk.msra.mxu2 %vm230_vm1, %v202_v55 }
  0xa7   : > { %926 = vmatpush.msk.msra.mxu3 %vm230_vm1, %v203_v56  ;;  %921 = vmatmul.msk.f32.vlgmr.msra.gmra.mxu0 %vm226_vm2, %v919_v40  ;;  %v958_v40 = vld [vmem:[%s1311_s1 + $0x40] sm:$0xff] }
  0xa8   : > { %925 = vmatmul.msk.f32.vlgmr.msra.gmra.mxu2 %vm226_vm2, %v204_v57  ;;  %927 = vmatmul.msk.f32.vlgmr.msra.gmra.mxu3 %vm226_vm2, %v204_v57 }
  0xac   : > { %v341_v61 = vpop.permute.xlu1 %340  ;;  %v339_v62 = vpop.permute.xlu0 %338 }
  0xad   : > { %v346_v63 = vsel %vm344_vm6, %v341_v61, %v343_v58  ;;  %v345_v0 = vsel %vm344_vm6, %v339_v62, %v341_v61  ;;  %v551_v13 = vpop.permute.xlu2 %550 }
  0xae   : > { %v349_v2 = vsel %vm1199_vm7, %v345_v0, 0.0  ;;  %v350_v3 = vsel %vm1203_vm8, %v346_v63, 0.0 }
  0xaf   : > { %929 = vmatpush.msk.msrb.mxu0 %vm230_vm1, %v349_v2  ;;  %931 = vmatpush.msk.msrb.mxu1 %vm230_vm1, %v350_v3 }
  0xb0   : > { %930 = vmatmul.msk.f32.vlgmr.msrb.gmra.mxu0 %vm226_vm2, %v928_v1  ;;  %932 = vmatmul.msk.f32.vlgmr.msrb.gmra.mxu1 %vm226_vm2, %v928_v1 }
  0xb1   : > { %939 = vmatpush.msk.msra.mxu0 %vm230_vm1, %v1163_v22  ;;  %941 = vmatpush.msk.msra.mxu1 %vm230_vm1, %v1165_v23 }
  0xb4   : > { %v417_v5 = vpop.permute.xlu1 %416  ;;  %v415_v6 = vpop.permute.xlu0 %414 }
  0xb5   : > { %v422_v7 = vsel %vm420_vm9, %v417_v5, %v419_v4  ;;  %v421_v8 = vsel %vm420_vm9, %v415_v6, %v417_v5  ;;  %v627_v21 = vpop.permute.xlu2 %626 }
  0xb6   : > { %v425_v10 = vsel %vm1177_vm4, %v421_v8, 0.0  ;;  %v426_v11 = vsel %vm1181_vm5, %v422_v7, 0.0 }
  0xb7   : > { %934 = vmatpush.msk.msrb.mxu2 %vm230_vm1, %v425_v10  ;;  %936 = vmatpush.msk.msrb.mxu3 %vm230_vm1, %v426_v11 }
  0xb8   : > { %935 = vmatmul.msk.f32.vlgmr.msrb.gmra.mxu2 %vm226_vm2, %v933_v9  ;;  %937 = vmatmul.msk.f32.vlgmr.msrb.gmra.mxu3 %vm226_vm2, %v933_v9 }
  0xb9   : > { %940 = vmatmul.msk.f32.vlgmr.msra.gmra.mxu0 %vm226_vm2, %v938_v12  ;;  %942 = vmatmul.msk.f32.vlgmr.msra.gmra.mxu1 %vm226_vm2, %v938_v12 }
  0xbd   : > { %v705_v29 = vpop.permute.xlu2 %704 }
  0xc4   : > { %v549_v14 = vpop.permute.xlu1 %548  ;;  %v547_v15 = vpop.permute.xlu0 %546 }
  0xc5   : > { %v554_v16 = vsel %vm552_vm10, %v549_v14, %v551_v13  ;;  %v553_v17 = vsel %vm552_vm10, %v547_v15, %v549_v14  ;;  %v773_v35 = vpop.permute.xlu2 %772 }
  0xc6   : > { %v558_v19 = vsel %vm1203_vm8, %v554_v16, 0.0  ;;  %v557_v20 = vsel %vm1199_vm7, %v553_v17, 0.0 }
  0xc7   : > { %944 = vmatpush.msk.msra.mxu2 %vm230_vm1, %v557_v20  ;;  %946 = vmatpush.msk.msra.mxu3 %vm230_vm1, %v558_v19 }
  0xc8   : > { %945 = vmatmul.msk.f32.vlgmr.msra.gmra.mxu2 %vm226_vm2, %v943_v18  ;;  %947 = vmatmul.msk.f32.vlgmr.msra.gmra.mxu3 %vm226_vm2, %v943_v18 }
  0xcc   : > { %v625_v22 = vpop.permute.xlu1 %624  ;;  %v623_v23 = vpop.permute.xlu0 %622 }
  0xcd   : > { %v630_v24 = vsel %vm628_vm11, %v625_v22, %v627_v21  ;;  %v629_v25 = vsel %vm628_vm11, %v623_v23, %v625_v22 }
  0xce   : > { %v634_v27 = vsel %vm1181_vm5, %v630_v24, 0.0  ;;  %v633_v28 = vsel %vm1177_vm4, %v629_v25, 0.0 }
  0xcf   : > { %949 = vmatpush.msk.msrb.mxu0 %vm230_vm1, %v633_v28  ;;  %951 = vmatpush.msk.msrb.mxu1 %vm230_vm1, %v634_v27 }
  0xd0   : > { %950 = vmatmul.msk.f32.vlgmr.msrb.gmra.mxu0 %vm226_vm2, %v948_v26  ;;  %952 = vmatmul.msk.f32.vlgmr.msrb.gmra.mxu1 %vm226_vm2, %v948_v26 }
  0xd4   : > { %v703_v30 = vpop.permute.xlu1 %702  ;;  %v701_v31 = vpop.permute.xlu0 %700 }
  0xd5   : > { %v708_v33 = vsel %vm706_vm12, %v703_v30, %v705_v29  ;;  %v707_v34 = vsel %vm706_vm12, %v701_v31, %v703_v30 }
  0xd6   : > { %954 = vmatpush.msk.msrb.mxu2 %vm230_vm1, %v707_v34  ;;  %956 = vmatpush.msk.msrb.mxu3 %vm230_vm1, %v708_v33 }
  0xd7   : > { %955 = vmatmul.msk.f32.vlgmr.msrb.gmra.mxu2 %vm226_vm2, %v953_v32  ;;  %957 = vmatmul.msk.f32.vlgmr.msrb.gmra.mxu3 %vm226_vm2, %v953_v32 }
  0xdc   : > { %v771_v36 = vpop.permute.xlu1 %770  ;;  %v769_v37 = vpop.permute.xlu0 %768 }
  0xdd   : > { %v776_v38 = vsel %vm774_vm13, %v771_v36, %v773_v35  ;;  %v775_v39 = vsel %vm774_vm13, %v769_v37, %v771_v36 }
  0xde   : > { %v780_v41 = vsel %vm1203_vm8, %v776_v38, 0.0  ;;  %v779_v42 = vsel %vm1199_vm7, %v775_v39, 0.0 }
  0xdf   : > { %959 = vmatpush.msk.msra.mxu0 %vm230_vm1, %v779_v42  ;;  %961 = vmatpush.msk.msra.mxu1 %vm230_vm1, %v780_v41 }
  0xe0   : > { %960 = vmatmul.msk.f32.vlgmr.msra.gmra.mxu0 %vm226_vm2, %v958_v40  ;;  %962 = vmatmul.msk.f32.vlgmr.msra.gmra.mxu1 %vm226_vm2, %v958_v40 }
 0x115   : > { %v272_v44 = vpop.f32.mrf.mxu1 }
 0x124   : > { %v252_v43 = vpop.f32.mrf.mxu0 }
 0x12b   : > { %v301_v45 = vpop.f32.mrf.mxu2  ;;  %v321_v46 = vpop.f32.mrf.mxu3 }
 0x12c   : > { %v302_v49 = vadd.f32 %v301_v45, %v252_v43  ;;  %v322_v50 = vadd.f32 %v321_v46, %v272_v44 }
 0x12d   : > { %v379_v47 = vpop.f32.mrf.mxu0  ;;  %v399_v48 = vpop.f32.mrf.mxu1 }
 0x12e   : > { %v402_v53 = vadd.f32 %v379_v47, %v302_v49  ;;  %v403_v54 = vadd.f32 %v399_v48, %v322_v50 }
 0x136   : > { %v511_v55 = vpop.f32.mrf.mxu0  ;;  %v531_v56 = vpop.f32.mrf.mxu1 }
 0x13b   : > { %v455_v51 = vpop.f32.mrf.mxu2  ;;  %v475_v52 = vpop.f32.mrf.mxu3 }
 0x13c   : > { %v478_v57 = vadd.f32 %v455_v51, %v402_v53  ;;  %v479_v58 = vadd.f32 %v475_v52, %v403_v54 }
 0x13e   : > { %v534_v61 = vadd.f32 %v511_v55, %v478_v57  ;;  %v535_v62 = vadd.f32 %v531_v56, %v479_v58 }
 0x14b   : > { %v587_v59 = vpop.f32.mrf.mxu2  ;;  %v607_v60 = vpop.f32.mrf.mxu3 }
 0x14c   : > { %v610_v63 = vadd.f32 %v587_v59, %v534_v61  ;;  %v611_v0 = vadd.f32 %v607_v60, %v535_v62 }
 0x14d   : > { %v663_v1 = vpop.f32.mrf.mxu0  ;;  %v683_v2 = vpop.f32.mrf.mxu1 }
 0x14e   : > { %v686_v3 = vadd.f32 %v663_v1, %v610_v63  ;;  %v687_v4 = vadd.f32 %v683_v2, %v611_v0 }
 0x15a   : > { %v733_v5 = vpop.f32.mrf.mxu2  ;;  %v753_v6 = vpop.f32.mrf.mxu3 }
 0x15b   : > { %v756_v7 = vadd.f32 %v733_v5, %v686_v3  ;;  %v757_v8 = vadd.f32 %v753_v6, %v687_v4 }
 0x15d   : > { %v809_v9 = vpop.f32.mrf.mxu0  ;;  %v829_v10 = vpop.f32.mrf.mxu1 }
 0x15e   : > { %v832_v11 = vadd.f32 %v809_v9, %v756_v7  ;;  %v833_v12 = vadd.f32 %v829_v10, %v757_v8 }
 0x160   : > { %834 = vst [vmem:[%s136_s17] sm:$0xff] %v832_v11 }
 0x161   : > { %835 = vst [vmem:[%s136_s17 + $0x8] sm:$0xff] %v833_v12 }
 0x162   : > { %1045 = shalt.err (!%p1042_p3)
}
 0x163   : > { %970 = dma.vmem_to_hbm [thread:$0]  (%p1144_p5), %s851_s21, 256, %s853_s22, %s837_s13  }
 0x164 PF: > { %p976_p4 = scmp.ge.s32.totalorder %s1080_s12, 2  ;;  %s864_s30 = sand.u32 1, %s1068_s9  }
 0x165   : > { %s865_s3 = scalar_lea.sflag [#allocation4], %s864_s30 }
 0x166   : > { %p973_p7 = pnand %p976_p4, %p1148_p6 }
 0x168   : > { %p974_p8 = pneg %p973_p7 }
 0x16a   : > { %1063 = dma.done.wait (%p974_p8), %s865_s3, 256  }
 0x16b   : > { %1065 = vsyncadd (%p974_p8), %s865_s3, 4294967040  ;;  %p12_p9 = scmp.ge.s32.totalorder %s1131_s15, 4   ;;  %s1323_s9 = smov %s1072_s10 }
 0x16c   : > { %s1324_s10 = smov %s1076_s11  ;;  %s1325_s11 = smov %s1142_s18 }
 0x16d   : > { %s1326_s12 = smov %s1131_s15  ;;  %14 = sbr.rel (!%p12_p9) target bundleno = 3 (0x3), region = 79 }
 0x172   :  { %871 = vsyncpa [#allocation4], 1 }
 0x173   :  { %873 = vsyncpa [#allocation4 + $0x1], 1 }

</bundles_post_ra>
